<compile_context>
chip_gen: v6e
topology: v6e:2x2x1
jax: 0.10.0
libtpu: 0.0.40
codegen_flags: <defaults>
</compile_context>

<pallas_src>
import numpy as np
import jax
import jax.numpy as jnp
from jax.experimental import pallas as pl
from jax.experimental.pallas import tpu as pltpu


def dct_mat_coeff(L=8):
    C = np.zeros((L, L), dtype=np.float64)
    for k in range(L):
        for n in range(L):
            if k == 0:
                C[k, n] = np.sqrt(1 / L)
            else:
                C[k, n] = np.sqrt(2 / L) * np.cos(np.pi * k * (1 / 2 + n) / L)
    return C


def _pick_width_tile(w):
    """Width chunk: a multiple of 128 that divides w (lane-dense), else full w."""
    if w <= 512 or w % 128 != 0:
        # TODO(synk): very wide, non-128-divisible widths fall back to wc=w and
        # a (w, w) block-diagonal row-DCT matrix (VMEM-heavy for w >~ 3000).
        return w
    for cand in (512, 384, 256, 128):
        if w % cand == 0:
            return cand
    return w


def _pick_row_tile(nbh, c, bh, wc, max_rb=32, max_bytes=2 << 20):
    """Block-rows per grid step: largest divisor of nbh under VMEM/unroll caps."""
    best = None
    for d in range(1, nbh + 1):
        if nbh % d:
            continue
        if (d * bh) % 8 != 0 and d != nbh:
            continue  # keep the second-minor input block dim 8-aligned (or full)
        if d > max_rb or c * d * bh * wc * 4 > max_bytes:
            continue
        best = d
    if best is None:
        best = 1 if bh % 8 == 0 else nbh
    return best


def _block_dct_kernel(x_ref, r_ref, l_ref, o_ref):
    # x_ref: (1, c, rb*bh, wc)   NCHW slab (rb block-rows, width chunk wc)
    # r_ref: (wc, wc)            block-diag kron(I, C_row^T)   (row DCT)
    # l_ref: (bh*c, c*bh)        channel-block-diag C_col      (column DCT)
    # o_ref: (1, rb, bh*c, wc)   rows ordered (u, ch), lanes ordered (jb, v)
    _, nc, rbh, wt = x_ref.shape
    rb = o_ref.shape[1]
    bh = rbh // rb

    # Row (width) DCT: one big lane-dense MXU matmul over the whole slab.
    x2 = x_ref[...].reshape(nc * rbh, wt).astype(jnp.float32)   # rows (ch, r, m)
    t = jnp.dot(x2, r_ref[...], preferred_element_type=jnp.float32)  # cols (jb, v)

    # Column (height) DCT per block-row; L is block-diagonal over channels only,
    # so wasted MXU flops stay O(c) and the kernel remains memory-bound.
    t4 = t.reshape(nc, rb, bh, wt)
    for r in range(rb):                      # static unroll (rb <= 32)
        tr = t4[:, r, :, :].reshape(nc * bh, wt)        # rows (ch, m)
        o_ref[0, r, :, :] = jnp.dot(l_ref[...], tr,
                                    preferred_element_type=jnp.float32)


def block_dct(x, block_size=(8, 8)):
    b, c, h, w = x.shape
    bh, bw = block_size
    assert h % bh == 0 and w % bw == 0
    nbh, nbw = h // bh, w // bw

    wc = _pick_width_tile(w)
    assert wc % bw == 0 and w % wc == 0
    nbw_tile = wc // bw
    rb = _pick_row_tile(nbh, c, bh, wc)
    assert nbh % rb == 0

    # --- deterministic "parameters": DCT basis matrices (module buffers).
    c_col = dct_mat_coeff(bh)
    c_row = dct_mat_coeff(bw)
    # Row-DCT matrix: R[jb*bw + n, jb*bw + v] = C_row[v, n]
    r_mat = np.kron(np.eye(nbw_tile), c_row.T).astype(np.float32)       # (wc, wc)
    # Column-DCT matrix: L[u*c + ch, ch*bh + m] = C_col[u, m]
    l_mat = np.zeros((bh * c, c * bh), dtype=np.float32)
    for u in range(bh):
        for ch in range(c):
            l_mat[u * c + ch, ch * bh:(ch + 1) * bh] = c_col[u]

    r_dev = jnp.asarray(r_mat)
    l_dev = jnp.asarray(l_mat)

    grid = (b, nbh // rb, w // wc)
    y = pl.pallas_call(
        _block_dct_kernel,
        out_shape=jax.ShapeDtypeStruct((b, nbh, bh * c, w), jnp.float32),
        grid_spec=pltpu.PrefetchScalarGridSpec(
            num_scalar_prefetch=0,
            grid=grid,
            in_specs=[
                # NCHW slab: rb block-rows x full channels x width chunk.
                pl.BlockSpec((1, c, rb * bh, wc), lambda bi, rc, cc: (bi, 0, rc, cc)),
                # Constant DCT matrices: block index never changes -> DMA'd once.
                pl.BlockSpec((wc, wc), lambda bi, rc, cc: (0, 0)),
                pl.BlockSpec((bh * c, c * bh), lambda bi, rc, cc: (0, 0)),
            ],
            out_specs=pl.BlockSpec((1, rb, bh * c, wc),
                                   lambda bi, rc, cc: (bi, rc, 0, cc)),
        ),
        compiler_params=pltpu.CompilerParams(
            dimension_semantics=("parallel", "parallel", "parallel"),
            vmem_limit_bytes=48 * 1024 * 1024,
        ),
    )(x, r_dev, l_dev)

    # y[b, ib, u*c+ch, jb*bw+v]  ->  out[b, (u*bw+v)*c+ch, ib, jb]
    # (two free reshapes + exactly one XLA transpose/copy)
    y6 = y.reshape(b, nbh, bh, c, nbw, bw)
    out = jnp.transpose(y6, (0, 2, 5, 3, 1, 4)).reshape(b, bh * bw * c, nbh, nbw)
    return out


def block_dct_reference(x_np, block_size=(8, 8)):
    # Pure-numpy reference mirroring BlockDCTModule.forward semantics.
    b, c, h, w = x_np.shape
    bh, bw = block_size
    nbh, nbw = h // bh, w // bw
    C_col = dct_mat_coeff(bh)
    C_row = dct_mat_coeff(bw)
    xn = np.asarray(x_np, dtype=np.float64)
    blocks = xn.reshape(b, c, nbh, bh, nbw, bw).transpose(0, 2, 4, 1, 3, 5)
    coeff = np.einsum('ij,...jk,lk->...il', C_col, blocks, C_row)  # C X C^T
    coeff = coeff.transpose(0, 1, 2, 4, 5, 3).reshape(b, nbh, nbw, bh * bw * c)
    return coeff.transpose(0, 3, 1, 2)


if __name__ == "__main__":
    key = jax.random.PRNGKey(0)
    k1, k2 = jax.random.split(key)

    # Shape consistent with the module: NCHW, 8x8 blocks.
    x = jax.random.normal(k1, (2, 4, 16, 16), dtype=jnp.float32)
    f = jax.jit(block_dct)
    out = jax.block_until_ready(f(x))
    assert out.shape == (2, 8 * 8 * 4, 2, 2), out.shape
    ref = block_dct_reference(np.asarray(x), block_size=(8, 8))
    np.testing.assert_allclose(np.asarray(out), ref, atol=1e-3, rtol=1e-3)

    # Second shape: 3 channels, rectangular, multiple block-rows per grid step.
    x2 = jax.random.normal(k2, (1, 3, 32, 48), dtype=jnp.float32)
    out2 = jax.block_until_ready(block_dct(x2, block_size=(8, 8)))
    assert out2.shape == (1, 8 * 8 * 3, 4, 6), out2.shape
    ref2 = block_dct_reference(np.asarray(x2), block_size=(8, 8))
    np.testing.assert_allclose(np.asarray(out2), ref2, atol=1e-3, rtol=1e-3)

    print("KERNEL_OK")
</pallas_src>

<mosaic_0001>
module attributes {stable_mosaic.version = 11 : i64} {
  func.func @_block_dct_kernel(%arg0: i32, %arg1: i32, %arg2: i32, %arg3: memref<1x4x16x16xf32, #tpu.memory_space<vmem>>, %arg4: memref<16x16xf32, #tpu.memory_space<vmem>>, %arg5: memref<32x32xf32, #tpu.memory_space<vmem>>, %arg6: memref<1x2x32x16xf32, #tpu.memory_space<vmem>>) attributes {dimension_semantics = [#tpu.dimension_semantics<parallel>, #tpu.dimension_semantics<parallel>, #tpu.dimension_semantics<parallel>], iteration_bounds = array<i64: 2, 1, 1>, scalar_prefetch = 0 : i64, scratch_operands = 0 : i64, tpu.core_type = #tpu.core_type<tc>, window_params = [{transform_indices = @transform_0, window_bounds = array<i64: 1, 4, 16, 16>}, {pipeline_mode = #tpu.pipeline_mode<synchronous>, transform_indices = @transform_1, window_bounds = array<i64: 16, 16>}, {pipeline_mode = #tpu.pipeline_mode<synchronous>, transform_indices = @transform_2, window_bounds = array<i64: 32, 32>}, {transform_indices = @transform_3, window_bounds = array<i64: 1, 2, 32, 16>}]} {
    %c0 = arith.constant 0 : index
    %c0_0 = arith.constant 0 : index
    %c0_1 = arith.constant 0 : index
    %c0_2 = arith.constant 0 : index
    %0 = vector.load %arg3[%c0, %c0_0, %c0_1, %c0_2] : memref<1x4x16x16xf32, #tpu.memory_space<vmem>>, vector<1x4x16x16xf32>
    %1 = vector.shape_cast %0 : vector<1x4x16x16xf32> to vector<64x16xf32>
    %c0_3 = arith.constant 0 : index
    %c0_4 = arith.constant 0 : index
    %2 = vector.load %arg4[%c0_3, %c0_4] : memref<16x16xf32, #tpu.memory_space<vmem>>, vector<16x16xf32>
    %cst = arith.constant dense<0.000000e+00> : vector<64x16xf32>
    %3 = tpu.matmul %1, %2, %cst {dimension_numbers = #tpu.dot_dimension_numbers<[1], [0], [0], [1], [0, 0, 1, 1], [], []>} : vector<64x16xf32>, vector<16x16xf32>, vector<64x16xf32> -> vector<64x16xf32>
    %4 = vector.shape_cast %3 : vector<64x16xf32> to vector<4x2x8x16xf32>
    %5 = vector.extract_strided_slice %4 {offsets = [0, 0, 0, 0], sizes = [4, 1, 8, 16], strides = [1, 1, 1, 1]} : vector<4x2x8x16xf32> to vector<4x1x8x16xf32>
    %6 = vector.shape_cast %5 : vector<4x1x8x16xf32> to vector<4x8x16xf32>
    %7 = vector.shape_cast %6 : vector<4x8x16xf32> to vector<32x16xf32>
    %c0_5 = arith.constant 0 : index
    %c0_6 = arith.constant 0 : index
    %8 = vector.load %arg5[%c0_5, %c0_6] : memref<32x32xf32, #tpu.memory_space<vmem>>, vector<32x32xf32>
    %cst_7 = arith.constant dense<0.000000e+00> : vector<32x16xf32>
    %9 = tpu.matmul %8, %7, %cst_7 {dimension_numbers = #tpu.dot_dimension_numbers<[1], [0], [0], [1], [0, 0, 1, 1], [], []>} : vector<32x32xf32>, vector<32x16xf32>, vector<32x16xf32> -> vector<32x16xf32>
    %c0_8 = arith.constant 0 : index
    %c0_9 = arith.constant 0 : index
    %c0_10 = arith.constant 0 : index
    %c0_11 = arith.constant 0 : index
    %10 = vector.load %arg6[%c0_8, %c0_9, %c0_10, %c0_11] : memref<1x2x32x16xf32, #tpu.memory_space<vmem>>, vector<1x1x32x16xf32>
    %11 = vector.shape_cast %10 : vector<1x1x32x16xf32> to vector<32x16xf32>
    %12 = vector.shape_cast %9 : vector<32x16xf32> to vector<1x1x32x16xf32>
    tpu.vector_store %arg6[%c0_8, %c0_9, %c0_10, %c0_11], %12 {strides = array<i32>} : memref<1x2x32x16xf32, #tpu.memory_space<vmem>>, vector<1x1x32x16xf32>,
    %13 = vector.extract_strided_slice %4 {offsets = [0, 1, 0, 0], sizes = [4, 1, 8, 16], strides = [1, 1, 1, 1]} : vector<4x2x8x16xf32> to vector<4x1x8x16xf32>
    %14 = vector.shape_cast %13 : vector<4x1x8x16xf32> to vector<4x8x16xf32>
    %15 = vector.shape_cast %14 : vector<4x8x16xf32> to vector<32x16xf32>
    %c0_12 = arith.constant 0 : index
    %c0_13 = arith.constant 0 : index
    %16 = vector.load %arg5[%c0_12, %c0_13] : memref<32x32xf32, #tpu.memory_space<vmem>>, vector<32x32xf32>
    %cst_14 = arith.constant dense<0.000000e+00> : vector<32x16xf32>
    %17 = tpu.matmul %16, %15, %cst_14 {dimension_numbers = #tpu.dot_dimension_numbers<[1], [0], [0], [1], [0, 0, 1, 1], [], []>} : vector<32x32xf32>, vector<32x16xf32>, vector<32x16xf32> -> vector<32x16xf32>
    %c0_15 = arith.constant 0 : index
    %c1 = arith.constant 1 : index
    %c0_16 = arith.constant 0 : index
    %c0_17 = arith.constant 0 : index
    %18 = vector.load %arg6[%c0_15, %c1, %c0_16, %c0_17] : memref<1x2x32x16xf32, #tpu.memory_space<vmem>>, vector<1x1x32x16xf32>
    %19 = vector.shape_cast %18 : vector<1x1x32x16xf32> to vector<32x16xf32>
    %20 = vector.shape_cast %17 : vector<32x16xf32> to vector<1x1x32x16xf32>
    tpu.vector_store %arg6[%c0_15, %c1, %c0_16, %c0_17], %20 {strides = array<i32>} : memref<1x2x32x16xf32, #tpu.memory_space<vmem>>, vector<1x1x32x16xf32>,
    return
  }
  func.func @transform_0(%arg0: i32, %arg1: i32, %arg2: i32) -> (i32, i32, i32, i32) {
    %c0_i32 = arith.constant 0 : i32
    %c0_i32_0 = arith.constant 0 : i32
    return %arg0, %c0_i32, %arg1, %arg2 : i32, i32, i32, i32
  }
  func.func @transform_1(%arg0: i32, %arg1: i32, %arg2: i32) -> (i32, i32) {
    %c0_i32 = arith.constant 0 : i32
    %c0_i32_0 = arith.constant 0 : i32
    %c0_i32_1 = arith.constant 0 : i32
    return %c0_i32, %c0_i32_0 : i32, i32
  }
  func.func @transform_2(%arg0: i32, %arg1: i32, %arg2: i32) -> (i32, i32) {
    %c0_i32 = arith.constant 0 : i32
    %c0_i32_0 = arith.constant 0 : i32
    %c0_i32_1 = arith.constant 0 : i32
    return %c0_i32, %c0_i32_0 : i32, i32
  }
  func.func @transform_3(%arg0: i32, %arg1: i32, %arg2: i32) -> (i32, i32, i32, i32) {
    %c0_i32 = arith.constant 0 : i32
    %c0_i32_0 = arith.constant 0 : i32
    return %arg0, %arg1, %c0_i32, %arg2 : i32, i32, i32, i32
  }
}

</mosaic_0001>

<bundles_post_ra>
// kernel: block_dct.1
= control target key start
LH: loop header
LB: loop body
LE: loop exit
PB: predicated region body
PF: predicated region fallthrough
CT: control target
= control target key end

     0   :  { %8 = vsyncpa [#allocation3], 0  ;;  %s1269_s0 = inlined_call_operand.hbm [shape: f32[2,4,16,16], index: 0, kind: input, shape index: {}]   ;;  %s1270_s1 = inlined_call_operand.hbm [shape: f32[16,16], index: 1, kind: input, shape index: {}]   ;;  %s1271_s2 = inlined_call_operand.hbm [shape: f32[32,32], index: 2, kind: input, shape index: {}]   ;;  %s1272_s3 = inlined_call_operand.vmem [shape: f32[2,2,32,16], index: 3, kind: output, shape index: {}]  }
   0x1   :  { %10 = vsyncpa [#allocation3 + $0x1], 0 }
   0x2   :  { %11 = vsyncpa [#allocation5], 0  ;;  %s1102_s12 = smov 0   ;;  %s1104_s13 = smov 0  }
   0x3   :  { %s1106_s14 = smov 0   ;;  %s1108_s15 = smov 0  }
   0x4   :  { %s1110_s16 = smov 0   ;;  %s1112_s17 = smov 0  }
   0x5 LB: > { %s754_s18 = sadd.s32 4294967295, %s1075_s17   ;;  %p60_p0 = scmp.ne.s32.totalorder %s1059_s13, %s1055_s12  ;;  %s1075_s17 = sphi %s1112_s17, %s17_s17   ;;  %s1071_s16 = sphi %s1110_s16, %s1282_s16   ;;  %s1067_s15 = sphi %s1108_s15, %s1281_s15   ;;  %s1063_s14 = sphi %s1106_s14, %s1280_s14   ;;  %s1059_s13 = sphi %s1104_s13, %s1279_s13   ;;  %s1055_s12 = sphi %s1102_s12, %s1278_s12  }
   0x6   : > { %p1132_p1 = scmp.eq.s32.totalorder %s754_s18, 0  ;;  %p756_p2 = scmp.ge.s32.totalorder %s1075_s17, 1 }
   0x7   : > { %p143_p3 = scmp.lt.s32.totalorder %s1075_s17, 3  ;;  %s1077_s22 = smov [#allocation4]  }
   0x8   : > { %p1140_p4 = por %p1132_p1, %p60_p0  ;;  %s155_s23 = sshll.u32 %s1077_s22, 4  ;;  %s156_s23 = int_to_ptr.vmem [resolvable:$true] %s155_s23 }
   0x9   : > { %p1144_p5 = pnand %p756_p2, %p143_p3  ;;  %s1078_s25 = smov [#allocation6]  }
   0xa   : > { %s168_s26 = sshll.u32 %s1078_s25, 4  ;;  %s952_s27 = scalar_lea.vmem %s156_s23, 256  ;;  %s169_s26 = int_to_ptr.vmem [resolvable:$true] %s168_s26 }
   0xb   : > { %p873_p6 = pneg %p1144_p5  ;;  %p953_p9 = scmp.ne.s32.totalorder %s156_s23, %s952_s27 }
   0xc   : > { %p960_p12 = scmp.lt.s32.totalorder %s156_s23, %s156_s23  ;;  %p961_p13 = scmp.lt.s32.totalorder %s952_s27, %s952_s27 }
   0xd   : > { %p1152_p7 = pnand %p873_p6, %p1132_p1 }
   0xe   : > { %p962_p0 = por %p961_p13, %p960_p12 }
   0xf   : > { %p943_p8 = pneg %p1152_p7 }
  0x11   : > { %p955_p10 = pnand %p953_p9, %p943_p8 }
  0x13   : > { %p956_p11 = pneg %p955_p10 }
  0x15   : > { %p963_p2 = pnand %p962_p0, %p956_p11 }
  0x17   : > { %966 = shalt.err (!%p963_p2)
}
  0x18   : > { %s1079_s28 = smov 128   ;;  %s1080_s29 = smov 8  }
  0x19   : > { %876 = dma.hbm_to_vmem [thread:$0]  (!%p1152_p7), %s1270_s1, 256, %s156_s23, [#allocation5], %s1079_s28, %s1079_s28, %s1080_s29  }
  0x1a   : > { %s978_s5 = scalar_lea.vmem %s169_s26, 512  ;;  %p986_p10 = scmp.lt.s32.totalorder %s169_s26, %s169_s26 }
  0x1b   : > { %p979_p3 = scmp.ne.s32.totalorder %s169_s26, %s978_s5  ;;  %p987_p11 = scmp.lt.s32.totalorder %s978_s5, %s978_s5 }
  0x1d   : > { %p981_p6 = pnand %p979_p3, %p943_p8  ;;  %p988_p12 = por %p987_p11, %p986_p10 }
  0x1f   : > { %p982_p9 = pneg %p981_p6 }
  0x21   : > { %p989_p13 = pnand %p988_p12, %p982_p9 }
  0x23   : > { %992 = shalt.err (!%p989_p13)
}
  0x24   : > { %879 = dma.hbm_to_vmem [thread:$0]  (!%p1152_p7), %s1271_s2, 512, %s169_s26, [#allocation5], %s1079_s28, %s1079_s28, %s1080_s29  }
  0x25   : > { %s36_s8 = sadd.s32 1, %s1071_s16  ;;  %s47_s9 = sadd.s32 1, %s1063_s14 }
  0x26   : > { %p38_p8 = scmp.ge.s32.totalorder %s36_s8, 2  ;;  %p54_p0 = scmp.ne.s32.totalorder %s1063_s14, %s1059_s13 }
  0x27   : > { %p55_p2 = scmp.eq.s32.totalorder %s1075_s17, 0  ;;  %p886_p3 = scmp.lt.s32.totalorder %s1075_s17, 2 }
  0x28   : > { %s1284_s8 = smov (%p38_p8, %s36_s8), 0  ;;  %s182_s10 = sand.u32 1, %s1063_s14  }
  0x29   : > { %p56_p6 = por %p55_p2, %p54_p0  ;;  %s40_s11 = ssub.s32 %s1071_s16, %s1284_s8 }
  0x2a   : > { %p45_p9 = scmp.eq.s32.totalorder %s40_s11, 0  ;;  %s760_s12 = sshll.u32 %s182_s10, 6 }
  0x2b   : > { %s791_s18 = sshll.u32 %s1071_s16, 10  ;;  %s186_s26 = scalar_lea.vmem [#allocation2], %s760_s12 }
  0x2c   : > { %s1193_s22 = scalar_select %p45_p9, %s1063_s14, %s47_s9  }
  0x2d   : > { %s195_s25 = scalar_lea.hbm %s1269_s0, %s791_s18  ;;  %s196_s27 = sshll.u32 %s186_s26, 4  ;;  %s197_s27 = int_to_ptr.vmem [resolvable:$true] %s196_s27 }
  0x2e   : > { %p1200_p7 = pnand %p886_p3, %p56_p6  ;;  %s183_s4 = scalar_lea.sflag [#allocation3], %s182_s10 }
  0x2f   : > { %s1006_s5 = scalar_lea.vmem %s197_s27, 1024  ;;  %s1081_s6 = smov [#allocation2]  }
  0x30   : > { %p995_p10 = pneg %p1200_p7  ;;  %p1007_p11 = scmp.ne.s32.totalorder %s197_s27, %s1006_s5 }
  0x31   : > { %s1011_s7 = sshll.u32 %s1081_s6, 4  ;;  %s1012_s7 = int_to_ptr.vmem [resolvable:$false] %s1011_s7 }
  0x32   : > { %p1009_p12 = pnand %p1007_p11, %p995_p10  ;;  %s1013_s9 = scalar_lea.vmem %s1012_s7, 2048 }
  0x33   : > { %p1014_p8 = scmp.lt.s32.totalorder %s197_s27, %s1012_s7  ;;  %p1015_p0 = scmp.lt.s32.totalorder %s1013_s9, %s1006_s5 }
  0x34   : > { %p1010_p13 = pneg %p1009_p12 }
  0x35   : > { %p1016_p2 = por %p1015_p0, %p1014_p8 }
  0x37   : > { %p1017_p9 = pnand %p1016_p2, %p1010_p13 }
  0x39   : > { %1020 = shalt.err (!%p1017_p9)
}
  0x3a   : > { %883 = dma.hbm_to_vmem [thread:$0]  (!%p1200_p7), %s195_s25, 1024, %s197_s27, %s183_s4, %s1079_s28, %s1079_s28, %s1080_s29  }
  0x3b   : > { %208 = sbr.rel (%p1144_p5) target bundleno = 495 (0x1ef), region = 32  ;;  %s210_s10 = sand.u32 (!%p1144_p5), 1, %s1059_s13  }
  0x3c   : > { %s764_s11 = sshll.u32 (!%p1144_p5), %s210_s10, 6  ;;  %s211_s12 = scalar_lea.sflag (!%p1144_p5), [#allocation3], %s210_s10 }
  0x3d   : > { %s214_s18 = scalar_lea.vmem (!%p1144_p5), [#allocation2], %s764_s11 }
  0x40   : > { %1046 = dma.done.wait (%p1140_p4), %s211_s12, 1024  }
  0x41   : > { %1048 = vsyncadd (%p1140_p4), %s211_s12, 4294966272 }
  0x42   : > { %1050 = dma.done.wait (%p1132_p1), [#allocation5], 768  }
  0x43   : > { %1052 = vsyncadd (%p1132_p1), [#allocation5], 4294966528  ;;  %vm278_vm0 = vcmask 130048   ;;  %v277_v0 = vld [vmem:[#allocation4 + $0x8] sm:$0xff]  ;;  %v276_v1 = vld [vmem:[#allocation4] sm:$0xff]  ;;  %vm412_vm1 = vcmask 261120  }
  0x44   : > { %v268_v2 = vld [vmem:[%s214_s18] sm:$0xff]  ;;  %819 = vmatprep.subr.mxu0 %v277_v0  ;;  %v269_v3 = vld [vmem:[%s214_s18 + $0x8] sm:$0xff]  ;;  %v270_v4 = vld [vmem:[%s214_s18 + $0x10] sm:$0xff]  ;;  %p255_p1 = scmp.lt.s32.totalorder %s1067_s15, 1 }
  0x45   : > { %823 = vmatprep.mubr.msk.f32.mxu0 %vm278_vm0, %v268_v2  ;;  %820 = vmatpush3.msra.mxu0 %v277_v0  ;;  %v271_v5 = vld [vmem:[%s214_s18 + $0x18] sm:$0xff]  ;;  %v272_v6 = vld [vmem:[%s214_s18 + $0x20] sm:$0xff]  ;;  %v273_v7 = vld [vmem:[%s214_s18 + $0x28] sm:$0xff] }
  0x46   : > { %821 = vmatprep.subr.mxu0 %v276_v1  ;;  %v274_v8 = vld [vmem:[%s214_s18 + $0x30] sm:$0xff]  ;;  %v275_v9 = vld [vmem:[%s214_s18 + $0x38] sm:$0xff]  ;;  %v410_v20 = vld [vmem:[#allocation6 + $0x10] sm:$0xff]  ;;  %s1286_s15 = smov (!%p255_p1, %s1067_s15), 1 }
  0x47   : > { %822 = vmatpush3.msra.mxu0 %v276_v1  ;;  %v408_v10 = vld [vmem:[#allocation6] sm:$0xff]  ;;  %v409_v19 = vld [vmem:[#allocation6 + $0x8] sm:$0xff]  ;;  %v411_v21 = vld [vmem:[#allocation6 + $0x18] sm:$0xff]  ;;  %s792_s19 = sshll.u32 %s1286_s15, 6 }
  0x48   : > { %824 = vmatmul.mubr.msk.f32.vlgmr.msra.gmra.mxu0 %vm278_vm0, %v269_v3  ;;  %843 = vmatprep.mubr.msk.f32.mxu1 %vm412_vm1, %v408_v10  ;;  %s266_s28 = scalar_lea.vmem %s1272_s3, %s792_s19 }
  0x49   : > { %826 = vmatprep.mubr.msk.f32.mxu0 %vm278_vm0, %v270_v4 }
  0x4c   : > { %827 = vmatmul.mubr.msk.f32.gmra.mxu0 %vm278_vm0, %v271_v5 }
  0x4d   : > { %829 = vmatprep.mubr.msk.f32.mxu0 %vm278_vm0, %v272_v6 }
  0x50   : > { %830 = vmatmul.mubr.msk.f32.gmra.mxu0 %vm278_vm0, %v273_v7 }
  0x51   : > { %832 = vmatprep.mubr.msk.f32.mxu0 %vm278_vm0, %v274_v8 }
  0x54   : > { %833 = vmatmul.mubr.msk.f32.gmra.mxu0 %vm278_vm0, %v275_v9 }
 0x108   : > { %v825_v11 = vpop.f32.mrf.mxu0 }
 0x10a   : > { %v369_v12 = vpop.f32.mrf.mxu0 }
 0x10c   : > { %v828_v13 = vpop.f32.mrf.mxu0 }
 0x10e   : > { %v379_v14 = vpop.f32.mrf.mxu0 }
 0x110   : > { %v831_v15 = vpop.f32.mrf.mxu0 }
 0x112   : > { %v389_v16 = vpop.f32.mrf.mxu0 }
 0x114   : > { %v834_v17 = vpop.f32.mrf.mxu0 }
 0x116   : > { %v399_v18 = vpop.f32.mrf.mxu0 }
 0x117   : > { %835 = vmatprep.subr.mxu1 %v399_v18 }
 0x118   : > { %836 = vmatpush3.msra.mxu1 %v399_v18 }
 0x119   : > { %837 = vmatprep.subr.mxu1 %v389_v16 }
 0x11a   : > { %838 = vmatpush3.msra.mxu1 %v389_v16 }
 0x11b   : > { %839 = vmatprep.subr.mxu1 %v379_v14 }
 0x11c   : > { %840 = vmatpush3.msra.mxu1 %v379_v14 }
 0x11d   : > { %841 = vmatprep.subr.mxu1 %v369_v12 }
 0x11e   : > { %842 = vmatpush3.msra.mxu1 %v369_v12 }
 0x11f   : > { %844 = vmatmul.mubr.msk.f32.vlgmr.msra.gmra.mxu1 %vm412_vm1, %v409_v19  ;;  %849 = vmatprep.subr.mxu1 %v834_v17 }
 0x120   : > { %850 = vmatpush3.msra.mxu1 %v834_v17  ;;  %846 = vmatprep.mubr.msk.f32.mxu1 %vm412_vm1, %v410_v20 }
 0x121   : > { %851 = vmatprep.subr.mxu1 %v831_v15 }
 0x122   : > { %852 = vmatpush3.msra.mxu1 %v831_v15 }
 0x123   : > { %847 = vmatmul.mubr.msk.f32.gmra.mxu1 %vm412_vm1, %v411_v21  ;;  %853 = vmatprep.subr.mxu1 %v828_v13 }
 0x124   : > { %854 = vmatpush3.msra.mxu1 %v828_v13  ;;  %857 = vmatprep.mubr.msk.f32.mxu1 %vm412_vm1, %v408_v10 }
 0x125   : > { %855 = vmatprep.subr.mxu1 %v825_v11 }
 0x126   : > { %856 = vmatpush3.msra.mxu1 %v825_v11 }
 0x127   : > { %858 = vmatmul.mubr.msk.f32.vlgmr.msra.gmra.mxu1 %vm412_vm1, %v409_v19 }
 0x128   : > { %860 = vmatprep.mubr.msk.f32.mxu1 %vm412_vm1, %v410_v20 }
 0x12b   : > { %861 = vmatmul.mubr.msk.f32.gmra.mxu1 %vm412_vm1, %v411_v21 }
 0x1df   : > { %v845_v22 = vpop.f32.mrf.mxu1 }
 0x1e0   : > { %511 = vst.msk [vmem:[%s266_s28 + $0x8] sm:$0xff] %vm278_vm0, %v845_v22 }
 0x1e1   : > { %v491_v23 = vpop.f32.mrf.mxu1 }
 0x1e2   : > { %510 = vst.msk [vmem:[%s266_s28] sm:$0xff] %vm278_vm0, %v491_v23 }
 0x1e3   : > { %v848_v24 = vpop.f32.mrf.mxu1 }
 0x1e4   : > { %513 = vst.msk [vmem:[%s266_s28 + $0x18] sm:$0xff] %vm278_vm0, %v848_v24 }
 0x1e5   : > { %v501_v25 = vpop.f32.mrf.mxu1 }
 0x1e6   : > { %512 = vst.msk [vmem:[%s266_s28 + $0x10] sm:$0xff] %vm278_vm0, %v501_v25 }
 0x1e7   : > { %v859_v26 = vpop.f32.mrf.mxu1 }
 0x1e8   : > { %786 = vst.msk [vmem:[%s266_s28 + $0x28] sm:$0xff] %vm278_vm0, %v859_v26 }
 0x1e9   : > { %v596_v27 = vpop.f32.mrf.mxu1 }
 0x1ea   : > { %785 = vst.msk [vmem:[%s266_s28 + $0x20] sm:$0xff] %vm278_vm0, %v596_v27 }
 0x1eb   : > { %v862_v28 = vpop.f32.mrf.mxu1 }
 0x1ec   : > { %788 = vst.msk [vmem:[%s266_s28 + $0x38] sm:$0xff] %vm278_vm0, %v862_v28 }
 0x1ed   : > { %v606_v29 = vpop.f32.mrf.mxu1 }
 0x1ee   : > { %787 = vst.msk [vmem:[%s266_s28 + $0x30] sm:$0xff] %vm278_vm0, %v606_v29 }
 0x1ef PF: > { %s17_s17 = sadd.s32 1, %s1075_s17   ;;  %s1278_s12 = smov %s1059_s13 }
 0x1f0   : > { %p14_p4 = scmp.ge.s32.totalorder %s17_s17, 4   ;;  %s1279_s13 = smov %s1063_s14 }
 0x1f1   : > { %s1280_s14 = smov %s1193_s22  ;;  %s1281_s15 = smov %s1071_s16 }
 0x1f2   : > { %s1282_s16 = smov %s1284_s8  ;;  %16 = sbr.rel (!%p14_p4) target bundleno = 5 (0x5), region = 81 }
 0x1f7   :  { %658 = vsyncpa [#allocation3], 1 }
 0x1f8   :  { %660 = vsyncpa [#allocation3 + $0x1], 1 }
 0x1f9   :  { %661 = vsyncpa [#allocation5], 1 }

</bundles_post_ra>
